<compile_context>
chip_gen: v7x
topology: tpu7x:2x2x1
jax: 0.10.0
libtpu: 0.0.40
codegen_flags: <defaults>
</compile_context>

<pallas_src>
import functools

import jax
import jax.numpy as jnp
from jax import lax
from jax.experimental import pallas as pl
from jax.experimental.pallas import tpu as pltpu


def _round_up(x, m):
    return ((x + m - 1) // m) * m


def _embedding_onehot_kernel(ids_ref, w_ref, out_ref, *, v_chunk, num_chunks):
    """One token tile: out[t, :] = table[ids[t], :] via a one-hot MXU matmul.

    ids_ref : VMEM int32 (T, 1)          token ids for this tile
    w_ref   : VMEM       (V_pad, D_pad)  full (padded) table, resident across the grid
    out_ref : VMEM       (T, D_pad)      lane/sublane-dense output tile
    """
    ids = ids_ref[...]                       # (T, 1) int32
    T, D = out_ref.shape

    def gather_chunk(base, acc):
        w_blk = w_ref[pl.ds(base, v_chunk), :]                         # (v_chunk, D)
        col = lax.broadcasted_iota(jnp.int32, (T, v_chunk), 1) + base  # column ids
        onehot = (ids == col).astype(w_blk.dtype)                      # (T, v_chunk)
        # Exact row select: 1.0 * row accumulated in f32.
        return acc + jnp.dot(onehot, w_blk, preferred_element_type=jnp.float32)

    acc = jnp.zeros((T, D), jnp.float32)
    if num_chunks == 1:
        acc = gather_chunk(0, acc)
    else:
        acc = lax.fori_loop(
            0,
            num_chunks,
            lambda c, a: gather_chunk(pl.multiple_of(c * v_chunk, v_chunk), a),
            acc,
        )
    out_ref[...] = acc.astype(out_ref.dtype)


def embedding_forward(tokens, weights, *, tile_tokens=256):
    """tokens: int [B, S]; weights: [V, D] -> [B, S, D] (same dtype as weights)."""
    B, S = tokens.shape
    V, D = weights.shape
    N = B * S
    w_itemsize = jnp.dtype(weights.dtype).itemsize

    # --- tile geometry -------------------------------------------------------
    # Sublane packing of the output dtype: f32 -> 8 rows/vreg, bf16 -> 16, int8 -> 32.
    packing = max(8, 32 // w_itemsize)
    T = min(_round_up(tile_tokens, packing), _round_up(N, packing))
    N_pad = _round_up(N, T)
    grid = (N_pad // T,)

    # Lane-pad D so every output store is an unmasked, lane-dense vst.
    D_pad = _round_up(D, 128)

    # Vocab chunking for the in-kernel one-hot matmul.
    V_CHUNK = 512
    if V <= V_CHUNK:
        V_pad = _round_up(V, 128)
        v_chunk = V_pad
    else:
        V_pad = _round_up(V, V_CHUNK)
        v_chunk = V_CHUNK
    num_chunks = V_pad // v_chunk

    # --- VMEM budget (generation aware, consistent check vs. requested limit) -
    try:
        vmem_cap = int(pltpu.get_tpu_info().vmem_capacity_bytes)
    except Exception:  # pragma: no cover - conservative default (v7x: 64 MiB/TC)
        vmem_cap = 64 * 1024 * 1024

    table_bytes = V_pad * D_pad * w_itemsize
    out_tile_bytes = T * D_pad * w_itemsize
    id_tile_bytes = T * 128 * 4  # (T, 1) int32 tile is lane-padded to 128
    work_bytes = T * D_pad * 4 + T * v_chunk * (4 + w_itemsize)  # f32 acc + iota + one-hot

    needed = (
        2 * table_bytes      # table may be double-buffered by the pipeline
        + 2 * out_tile_bytes  # double-buffered output tile
        + 2 * id_tile_bytes   # double-buffered id tile
        + work_bytes
        + (4 << 20)           # slack for compiler-internal scratch / spills
    )
    budget = vmem_cap - (8 << 20)  # leave headroom for neighbouring fusions

    # Clamp ids (PyTorch would raise on OOB ids; we clamp -- documented divergence).
    tok_clamped = jnp.clip(tokens.astype(jnp.int32), 0, V - 1)

    if needed > budget:
        # TODO(synk): HBM-streamed manual-DMA row gather for tables that do not
        # fit in VMEM; plain XLA gather fallback for now.
        return jnp.take(weights, tok_clamped, axis=0)

    vmem_limit = min(needed, vmem_cap)

    # --- pad inputs ----------------------------------------------------------
    tok_flat = jnp.pad(tok_clamped.reshape(N), (0, N_pad - N))
    tok_col = tok_flat.reshape(N_pad, 1)

    w_padded = weights
    if (V_pad, D_pad) != (V, D):
        # Padded rows/cols are zeros; clamped ids never select them.
        w_padded = jnp.pad(weights, ((0, V_pad - V), (0, D_pad - D)))

    kernel = functools.partial(
        _embedding_onehot_kernel, v_chunk=v_chunk, num_chunks=num_chunks
    )

    out = pl.pallas_call(
        kernel,
        out_shape=jax.ShapeDtypeStruct((N_pad, D_pad), weights.dtype),
        grid_spec=pltpu.PrefetchScalarGridSpec(
            num_scalar_prefetch=0,
            grid=grid,
            in_specs=[
                # Per-tile token ids as a VMEM vector (feeds the vectorized gather).
                pl.BlockSpec((T, 1), lambda i: (i, 0)),
                # Full table as a single block: constant index -> DMA'd once, resident.
                pl.BlockSpec((V_pad, D_pad), lambda i: (0, 0)),
            ],
            out_specs=pl.BlockSpec((T, D_pad), lambda i: (i, 0)),
        ),
        compiler_params=pltpu.CompilerParams(
            dimension_semantics=("parallel",),
            vmem_limit_bytes=vmem_limit,
        ),
    )(tok_col, w_padded)

    return out[:N, :D].reshape(B, S, D)


if __name__ == "__main__":
    # Deterministic "configuration" + parameter init (matches nn.init.normal_
    # with std = initialization_range on a [vocab, d_model] table).
    vocabulary_size = 64
    embedding_dimensionality = 128
    initialization_range = 0.02
    batch, seq = 2, 8

    key = jax.random.PRNGKey(0)
    k_w, k_t = jax.random.split(key)

    embedding_weights = initialization_range * jax.random.normal(
        k_w, (vocabulary_size, embedding_dimensionality), dtype=jnp.float32
    )
    tokens = jax.random.randint(
        k_t, (batch, seq), minval=0, maxval=vocabulary_size, dtype=jnp.int32
    )

    out = embedding_forward(tokens, embedding_weights)
    out = jax.block_until_ready(out)

    # Reference check against plain JAX indexing (same semantics as torch's
    # weight[tokens]).
    ref = embedding_weights[tokens]
    assert out.shape == (batch, seq, embedding_dimensionality)
    assert out.dtype == jnp.float32
    assert jnp.allclose(out, ref), "mismatch vs reference gather"

    print("KERNEL_OK")
</pallas_src>

<mosaic_0001>
module attributes {stable_mosaic.version = 11 : i64} {
  func.func @_embedding_onehot_kernel(%arg0: i32, %arg1: memref<16x1xi32, #tpu.memory_space<vmem>>, %arg2: memref<128x128xf32, #tpu.memory_space<vmem>>, %arg3: memref<16x128xf32, #tpu.memory_space<vmem>>) attributes {dimension_semantics = [#tpu.dimension_semantics<parallel>], iteration_bounds = array<i64: 1>, scalar_prefetch = 0 : i64, scratch_operands = 0 : i64, tpu.core_type = #tpu.core_type<tc>, window_params = [{transform_indices = @transform_0, window_bounds = array<i64: 16, 1>}, {pipeline_mode = #tpu.pipeline_mode<synchronous>, transform_indices = @transform_1, window_bounds = array<i64: 128, 128>}, {transform_indices = @transform_2, window_bounds = array<i64: 16, 128>}]} {
    %c0 = arith.constant 0 : index
    %c0_0 = arith.constant 0 : index
    %0 = vector.load %arg1[%c0, %c0_0] : memref<16x1xi32, #tpu.memory_space<vmem>>, vector<16x1xi32>
    %cst = arith.constant 0.000000e+00 : f32
    %1 = vector.broadcast %cst : f32 to vector<16x128xf32>
    %c0_1 = arith.constant 0 : index
    %c0_2 = arith.constant 0 : index
    %2 = vector.load %arg2[%c0_1, %c0_2] : memref<128x128xf32, #tpu.memory_space<vmem>>, vector<128x128xf32>
    %3 = tpu.iota {dimensions = array<i32: 1>} : vector<16x128xi32>
    %c0_i32 = arith.constant 0 : i32
    %4 = vector.broadcast %c0_i32 : i32 to vector<16x128xi32>
    %5 = arith.addi %3, %4 : vector<16x128xi32>
    %6 = vector.broadcast %0 : vector<16x1xi32> to vector<16x128xi32>
    %7 = arith.cmpi eq, %6, %5 : vector<16x128xi32>
    %8 = arith.extui %7 : vector<16x128xi1> to vector<16x128xi32>
    %9 = arith.sitofp %8 : vector<16x128xi32> to vector<16x128xf32>
    %cst_3 = arith.constant dense<0.000000e+00> : vector<16x128xf32>
    %10 = tpu.matmul %9, %2, %cst_3 {dimension_numbers = #tpu.dot_dimension_numbers<[1], [0], [0], [1], [0, 0, 1, 1], [], []>} : vector<16x128xf32>, vector<128x128xf32>, vector<16x128xf32> -> vector<16x128xf32>
    %11 = arith.addf %1, %10 : vector<16x128xf32>
    %c0_4 = arith.constant 0 : index
    %c0_5 = arith.constant 0 : index
    %12 = vector.load %arg3[%c0_4, %c0_5] : memref<16x128xf32, #tpu.memory_space<vmem>>, vector<16x128xf32>
    tpu.vector_store %arg3[%c0_4, %c0_5], %11 {strides = array<i32>} : memref<16x128xf32, #tpu.memory_space<vmem>>, vector<16x128xf32>,
    return
  }
  func.func @transform_0(%arg0: i32) -> (i32, i32) {
    %c0_i32 = arith.constant 0 : i32
    %c0_i32_0 = arith.constant 0 : i32
    return %arg0, %c0_i32 : i32, i32
  }
  func.func @transform_1(%arg0: i32) -> (i32, i32) {
    %c0_i32 = arith.constant 0 : i32
    %c0_i32_0 = arith.constant 0 : i32
    %c0_i32_1 = arith.constant 0 : i32
    return %c0_i32, %c0_i32_0 : i32, i32
  }
  func.func @transform_2(%arg0: i32) -> (i32, i32) {
    %c0_i32 = arith.constant 0 : i32
    %c0_i32_0 = arith.constant 0 : i32
    return %arg0, %c0_i32 : i32, i32
  }
}

</mosaic_0001>

<bundles_post_ra>
// kernel: tpu_custom_call.1
= control target key start
LH: loop header
LB: loop body
LE: loop exit
PB: predicated region body
PF: predicated region fallthrough
CT: control target
= control target key end

     0   :  { %7 = vsyncpa [#allocation3], 0  ;;  %s353_s0 = inlined_call_operand.vmem [shape: s32[16,1], index: 0, kind: input, shape index: {}]   ;;  %s354_s1 = inlined_call_operand.hbm [shape: f32[128,128], index: 1, kind: input, shape index: {}]   ;;  %s355_s2 = inlined_call_operand.hbm [shape: f32[16,128], index: 2, kind: output, shape index: {}]  }
   0x1   :  { %8 = vsyncpa [#allocation4], 0  ;;  %s296_s9 = smov [#allocation2]   ;;  %s248_s13 = scalar_lea.hbm %s354_s1, 2048 }
   0x2   :  { %s16_s10 = sshll.u32 %s296_s9, 4  ;;  %p249_p0 = scmp.ne.s32.totalorder %s354_s1, %s248_s13  ;;  %s17_s10 = int_to_ptr.vmem [resolvable:$true] %s16_s10 }
   0x3   :  { %p252_p1 = scmp.lt.u32.totalorder %s248_s13, %s354_s1 }
   0x5   :  { %p254_p2 = pnand %p252_p1, %p249_p0 }
   0x7   :  { %257 = shalt.err (!%p254_p2)
}
   0x8   :  { %s258_s18 = scalar_lea.vmem %s17_s10, 2048  ;;  %p263_p4 = scmp.lt.s32.totalorder %s17_s10, %s17_s10 }
   0x9   :  { %p259_p3 = scmp.ne.s32.totalorder %s17_s10, %s258_s18  ;;  %p264_p5 = scmp.lt.s32.totalorder %s258_s18, %s258_s18 }
   0xb   :  { %p265_p6 = por %p264_p5, %p263_p4 }
   0xd   :  { %p266_p7 = pnand %p265_p6, %p259_p3 }
   0xf   :  { %269 = shalt.err (!%p266_p7)
}
  0x10   :  { %s297_s19 = smov 128   ;;  %s298_s20 = smov 8  }
  0x11   :  { %22 = dma.hbm_to_vmem [thread:$0]  %s354_s1, 2048, %s17_s10, [#allocation3], %s297_s19, %s297_s19, %s298_s20  }
  0x12   :  { %292 = dma.done.wait [#allocation3], 2048  }
  0x13   :  { %293 = vsyncadd [#allocation3], 4294965248  ;;  %v299_v0 = vmov 0   ;;  %v26_v1 = vld [vmem:[%s353_s0] sm:$0xff]  ;;  %v29_v3 = vld [vmem:[#allocation2 + $0x8] sm:$0xff]  ;;  %v44_v27 = vlaneseq  ;;  %v300_v30 = vmov 1.0  }
  0x14   :  { %247 = vset.pattern.permute.xlu0 %v299_v0  ;;  %v28_v2 = vld [vmem:[#allocation2] sm:$0xff]  ;;  %v30_v4 = vld [vmem:[#allocation2 + $0x10] sm:$0xff]  ;;  %v31_v5 = vld [vmem:[#allocation2 + $0x18] sm:$0xff] }
  0x15   :  { %47 = vperm.xlu0 %247, %v26_v1   ;;  %v27_v6 = vld [vmem:[%s353_s0 + $0x8] sm:$0xff]  ;;  %v209_v7 = vpack.c.bf16 %v29_v3, %v28_v2  ;;  %v213_v8 = vpack.c.bf16 %v31_v5, %v30_v4  ;;  %v32_v9 = vld [vmem:[#allocation2 + $0x20] sm:$0xff]  ;;  %v34_v12 = vld [vmem:[#allocation2 + $0x30] sm:$0xff]  ;;  %v45_v28 = vand.u32 127, %v44_v27  ;;  %s301_s0 = smov [#allocation5]  }
  0x16   :  { %v33_v10 = vld [vmem:[#allocation2 + $0x28] sm:$0xff]  ;;  %v35_v13 = vld [vmem:[#allocation2 + $0x38] sm:$0xff]  ;;  %v36_v15 = vld [vmem:[#allocation2 + $0x40] sm:$0xff]  ;;  %s140_s1 = sshll.u32 %s301_s0, 4  ;;  %s141_s1 = int_to_ptr.vmem [resolvable:$true] %s140_s1 }
  0x17   :  { %210 = vmatprep.subr.bf16.mxu0 %v209_v7  ;;  %v217_v11 = vpack.c.bf16 %v33_v10, %v32_v9  ;;  %v221_v14 = vpack.c.bf16 %v35_v13, %v34_v12  ;;  %v37_v16 = vld [vmem:[#allocation2 + $0x48] sm:$0xff]  ;;  %v38_v18 = vld [vmem:[#allocation2 + $0x50] sm:$0xff]  ;;  %v39_v19 = vld [vmem:[#allocation2 + $0x58] sm:$0xff]  ;;  %s270_s27 = scalar_lea.vmem %s141_s1, 256  ;;  %p275_p9 = scmp.lt.s32.totalorder %s141_s1, %s141_s1 }
  0x18   :  { %212 = vmatpush3.bf16.msra.mxu0 %v209_v7  ;;  %v225_v17 = vpack.c.bf16 %v37_v16, %v36_v15  ;;  %v229_v20 = vpack.c.bf16 %v39_v19, %v38_v18  ;;  %v40_v21 = vld [vmem:[#allocation2 + $0x60] sm:$0xff]  ;;  %v41_v22 = vld [vmem:[#allocation2 + $0x68] sm:$0xff]  ;;  %v42_v24 = vld [vmem:[#allocation2 + $0x70] sm:$0xff]  ;;  %p271_p8 = scmp.ne.s32.totalorder %s141_s1, %s270_s27  ;;  %p276_p10 = scmp.lt.s32.totalorder %s270_s27, %s270_s27 }
  0x19   :  { %50 = vperm.xlu0 %247, %v27_v6   ;;  %214 = vmatprep.subr.bf16.mxu0 %v213_v8  ;;  %v233_v23 = vpack.c.bf16 %v41_v22, %v40_v21  ;;  %v43_v25 = vld [vmem:[#allocation2 + $0x78] sm:$0xff] }
  0x1a   :  { %v237_v26 = vpack.c.bf16 %v43_v25, %v42_v24  ;;  %p277_p11 = por %p276_p10, %p275_p9 }
  0x1c   :  { %216 = vmatpush3.bf16.msra.mxu0 %v213_v8  ;;  %p278_p12 = pnand %p277_p11, %p271_p8 }
  0x1d   :  { %218 = vmatprep.subr.bf16.mxu0 %v217_v11 }
  0x20   :  { %220 = vmatpush3.bf16.msra.mxu0 %v217_v11 }
  0x21   :  { %222 = vmatprep.subr.bf16.mxu0 %v221_v14 }
  0x24   :  { %224 = vmatpush3.bf16.msra.mxu0 %v221_v14 }
  0x25   :  { %226 = vmatprep.subr.bf16.mxu0 %v225_v17 }
  0x28   :  { %228 = vmatpush3.bf16.msra.mxu0 %v225_v17 }
  0x29   :  { %230 = vmatprep.subr.bf16.mxu0 %v229_v20 }
  0x2c   :  { %232 = vmatpush3.bf16.msra.mxu0 %v229_v20 }
  0x2d   :  { %234 = vmatprep.subr.bf16.mxu0 %v233_v23 }
  0x30   :  { %236 = vmatpush3.bf16.msra.mxu0 %v233_v23 }
  0x31   :  { %238 = vmatprep.subr.bf16.mxu0 %v237_v26 }
  0x34   :  { %240 = vmatpush3.bf16.msra.mxu0 %v237_v26 }
  0x94   :  { %v48_v29 = vpop.permute.xlu0 %47 }
  0x95   :  { %vm52_vm0 = vcmp.eq.s32.totalorder %v48_v29, %v45_v28 }
  0x96   :  { %206 = vmatprep.mubr.msk.f32.mxu0 %vm52_vm0, %v300_v30 }
  0x98   :  { %v51_v31 = vpop.permute.xlu0 %50 }
  0x99   :  { %vm53_vm1 = vcmp.eq.s32.totalorder %v51_v31, %v45_v28 }
  0x9a   :  { %207 = vmatmul.mubr.msk.f32.vlgmr.msra.gmra.mrb[0].mxu0 %vm53_vm1, %v300_v30 }
 0x16d   :  { %v208_v32 = vpop.f32.mrb[0].mxu0 }
 0x16e   :  { %134 = vst [vmem:[#allocation5 + $0x8] sm:$0xff] %v208_v32  ;;  %v124_v33 = vpop.f32.mrb[1].mxu0 }
 0x16f   :  { %133 = vst [vmem:[#allocation5] sm:$0xff] %v124_v33 }
 0x170   :  { %281 = shalt.err (!%p278_p12)
}
 0x171   :  { %s282_s30 = scalar_lea.hbm %s355_s2, 256 }
 0x172   :  { %p283_p13 = scmp.ne.s32.totalorder %s355_s2, %s282_s30  ;;  %p286_p0 = scmp.lt.u32.totalorder %s282_s30, %s355_s2 }
 0x174   :  { %p288_p1 = pnand %p286_p0, %p283_p13 }
 0x176   :  { %291 = shalt.err (!%p288_p1)
}
 0x177   :  { %146 = dma.vmem_to_hbm [thread:$0]  %s141_s1, 256, %s355_s2, [#allocation4], %s297_s19, %s297_s19, %s298_s20  }
 0x178   :  { %294 = dma.done.wait [#allocation4], 256  }
 0x179   :  { %295 = vsyncadd [#allocation4], 4294967040 }
 0x17a   :  { %150 = vsyncpa [#allocation3], 1 }
 0x17b   :  { %151 = vsyncpa [#allocation4], 1 }

</bundles_post_ra>
